<compile_context>
chip_gen: v6e
topology: v6e:2x2x1
jax: 0.10.0
libtpu: 0.0.40
codegen_flags: <defaults>
</compile_context>

<pallas_src>
import jax
import jax.numpy as jnp
from jax.experimental import pallas as pl
from jax.experimental.pallas import tpu as pltpu


def _round_up(n, m):
    return ((n + m - 1) // m) * m


def mlp_kernel(x_ref, w1_ref, b1_ref, w2_ref, b2_ref, o_ref):
    # hidden = relu(x @ w1 + b1)   (f32 accumulation, f32 epilogue)
    h = jnp.dot(x_ref[...], w1_ref[...], preferred_element_type=jnp.float32)
    h = jnp.maximum(h + b1_ref[...], 0.0)          # b1 is (1, Hp) -> broadcasts
    # out = relu(h @ w2 + b2)
    y = jnp.dot(h.astype(w2_ref.dtype), w2_ref[...],
                preferred_element_type=jnp.float32)
    y = jnp.maximum(y + b2_ref[...], 0.0)          # b2 is (1, Cp)
    o_ref[...] = y.astype(o_ref.dtype)


def mlp_forward(x, w1, b1, w2, b2, *, block_rows=512,
                compute_dtype=jnp.float32):
    """Fused MLP forward. w1:(K,H) w2:(H,C) b1:(1,H) b2:(1,C); returns (B,C)."""
    B, K = x.shape
    H = w1.shape[1]
    C = w2.shape[1]

    # Lane-dense padding: hidden/class -> multiples of 128.
    Hp = _round_up(H, 128)
    Cp = _round_up(C, 128)

    # Batch tile: multiple of 8, capped by block_rows; pad B to a multiple.
    block_rows = max(8, _round_up(block_rows, 8))
    TB = min(block_rows, _round_up(B, 8))
    Bp = _round_up(B, TB)

    # Zero-pad (padded hidden/class columns stay exactly zero through ReLU).
    xp = jnp.zeros((Bp, K), compute_dtype).at[:B, :].set(
        x.astype(compute_dtype))
    w1p = jnp.zeros((K, Hp), compute_dtype).at[:, :H].set(
        w1.astype(compute_dtype))
    b1p = jnp.zeros((1, Hp), jnp.float32).at[:, :H].set(b1.astype(jnp.float32))
    w2p = jnp.zeros((Hp, Cp), compute_dtype).at[:H, :C].set(
        w2.astype(compute_dtype))
    b2p = jnp.zeros((1, Cp), jnp.float32).at[:, :C].set(b2.astype(jnp.float32))

    grid = (pl.cdiv(Bp, TB),)

    out = pl.pallas_call(
        mlp_kernel,
        out_shape=jax.ShapeDtypeStruct((Bp, Cp), jnp.float32),
        grid=grid,
        in_specs=[
            # x tile marches with the grid; weights/biases stay resident.
            pl.BlockSpec((TB, K), lambda i: (i, 0)),
            pl.BlockSpec((K, Hp), lambda i: (0, 0)),
            pl.BlockSpec((1, Hp), lambda i: (0, 0)),
            pl.BlockSpec((Hp, Cp), lambda i: (0, 0)),
            pl.BlockSpec((1, Cp), lambda i: (0, 0)),
        ],
        out_specs=pl.BlockSpec((TB, Cp), lambda i: (i, 0)),
        compiler_params=pltpu.CompilerParams(
            dimension_semantics=("parallel",),       # megacore on v7x
            vmem_limit_bytes=64 * 1024 * 1024,
        ),
    )(xp, w1p, b1p, w2p, b2p)

    return out[:B, :C].astype(x.dtype)


if __name__ == "__main__":
    # Small shapes consistent with the module:
    #   num_input=64, num_hidden=32, num_class=32, batch=16
    B, NUM_INPUT, NUM_HIDDEN, NUM_CLASS = 16, 64, 32, 32

    key = jax.random.PRNGKey(0)
    kx, kw1, kb1, kw2, kb2 = jax.random.split(key, 5)

    x = jax.random.normal(kx, (B, NUM_INPUT), dtype=jnp.float32)
    # Deterministic parameter init (PyTorch-style uniform bounds).
    bound1 = 1.0 / (NUM_INPUT ** 0.5)
    w1 = jax.random.uniform(kw1, (NUM_INPUT, NUM_HIDDEN), jnp.float32,
                            -bound1, bound1)
    b1 = jax.random.uniform(kb1, (1, NUM_HIDDEN), jnp.float32,
                            -bound1, bound1)
    bound2 = 1.0 / (NUM_HIDDEN ** 0.5)
    w2 = jax.random.uniform(kw2, (NUM_HIDDEN, NUM_CLASS), jnp.float32,
                            -bound2, bound2)
    b2 = jax.random.uniform(kb2, (1, NUM_CLASS), jnp.float32,
                            -bound2, bound2)

    # Reference in plain JAX.
    ref = jnp.maximum(jnp.maximum(x @ w1 + b1, 0.0) @ w2 + b2, 0.0)

    # f32 compute path (block_rows=8 -> grid of 2 batch tiles, exercises
    # the pipelined path even at this tiny batch).
    out_f32 = mlp_forward(x, w1, b1, w2, b2, block_rows=8,
                          compute_dtype=jnp.float32)
    jax.block_until_ready(out_f32)
    assert out_f32.shape == (B, NUM_CLASS)
    assert jnp.allclose(out_f32, ref, atol=1e-4, rtol=1e-4)

    # bf16 dot operands (f32 accumulation) -- the recommended production path.
    out_bf16 = mlp_forward(x, w1, b1, w2, b2, block_rows=8,
                           compute_dtype=jnp.bfloat16)
    jax.block_until_ready(out_bf16)
    assert out_bf16.shape == (B, NUM_CLASS)
    assert jnp.allclose(out_bf16, ref, atol=3e-2, rtol=3e-2)

    print("KERNEL_OK")
</pallas_src>

<mosaic_0001>
module attributes {stable_mosaic.version = 11 : i64} {
  func.func @mlp_kernel(%arg0: i32, %arg1: memref<8x64xf32, #tpu.memory_space<vmem>>, %arg2: memref<64x128xf32, #tpu.memory_space<vmem>>, %arg3: memref<1x128xf32, #tpu.memory_space<vmem>>, %arg4: memref<128x128xf32, #tpu.memory_space<vmem>>, %arg5: memref<1x128xf32, #tpu.memory_space<vmem>>, %arg6: memref<8x128xf32, #tpu.memory_space<vmem>>) attributes {dimension_semantics = [#tpu.dimension_semantics<parallel>], iteration_bounds = array<i64: 2>, scalar_prefetch = 0 : i64, scratch_operands = 0 : i64, tpu.core_type = #tpu.core_type<tc>, window_params = [{transform_indices = @transform_0, window_bounds = array<i64: 8, 64>}, {pipeline_mode = #tpu.pipeline_mode<synchronous>, transform_indices = @transform_1, window_bounds = array<i64: 64, 128>}, {pipeline_mode = #tpu.pipeline_mode<synchronous>, transform_indices = @transform_2, window_bounds = array<i64: 1, 128>}, {pipeline_mode = #tpu.pipeline_mode<synchronous>, transform_indices = @transform_3, window_bounds = array<i64: 128, 128>}, {pipeline_mode = #tpu.pipeline_mode<synchronous>, transform_indices = @transform_4, window_bounds = array<i64: 1, 128>}, {transform_indices = @transform_5, window_bounds = array<i64: 8, 128>}]} {
    %c0 = arith.constant 0 : index
    %c0_0 = arith.constant 0 : index
    %0 = vector.load %arg1[%c0, %c0_0] : memref<8x64xf32, #tpu.memory_space<vmem>>, vector<8x64xf32>
    %c0_1 = arith.constant 0 : index
    %c0_2 = arith.constant 0 : index
    %1 = vector.load %arg2[%c0_1, %c0_2] : memref<64x128xf32, #tpu.memory_space<vmem>>, vector<64x128xf32>
    %cst = arith.constant dense<0.000000e+00> : vector<8x128xf32>
    %2 = tpu.matmul %0, %1, %cst {dimension_numbers = #tpu.dot_dimension_numbers<[1], [0], [0], [1], [0, 0, 1, 1], [], []>} : vector<8x64xf32>, vector<64x128xf32>, vector<8x128xf32> -> vector<8x128xf32>
    %c0_3 = arith.constant 0 : index
    %c0_4 = arith.constant 0 : index
    %3 = vector.load %arg3[%c0_3, %c0_4] : memref<1x128xf32, #tpu.memory_space<vmem>>, vector<1x128xf32>
    %4 = vector.broadcast %3 : vector<1x128xf32> to vector<8x128xf32>
    %5 = arith.addf %2, %4 : vector<8x128xf32>
    %cst_5 = arith.constant 0.000000e+00 : f32
    %6 = vector.broadcast %cst_5 : f32 to vector<8x128xf32>
    %7 = arith.maximumf %5, %6 : vector<8x128xf32>
    %c0_6 = arith.constant 0 : index
    %c0_7 = arith.constant 0 : index
    %8 = vector.load %arg4[%c0_6, %c0_7] : memref<128x128xf32, #tpu.memory_space<vmem>>, vector<128x128xf32>
    %cst_8 = arith.constant dense<0.000000e+00> : vector<8x128xf32>
    %9 = tpu.matmul %7, %8, %cst_8 {dimension_numbers = #tpu.dot_dimension_numbers<[1], [0], [0], [1], [0, 0, 1, 1], [], []>} : vector<8x128xf32>, vector<128x128xf32>, vector<8x128xf32> -> vector<8x128xf32>
    %c0_9 = arith.constant 0 : index
    %c0_10 = arith.constant 0 : index
    %10 = vector.load %arg5[%c0_9, %c0_10] : memref<1x128xf32, #tpu.memory_space<vmem>>, vector<1x128xf32>
    %11 = vector.broadcast %10 : vector<1x128xf32> to vector<8x128xf32>
    %12 = arith.addf %9, %11 : vector<8x128xf32>
    %cst_11 = arith.constant 0.000000e+00 : f32
    %13 = vector.broadcast %cst_11 : f32 to vector<8x128xf32>
    %14 = arith.maximumf %12, %13 : vector<8x128xf32>
    %c0_12 = arith.constant 0 : index
    %c0_13 = arith.constant 0 : index
    %15 = vector.load %arg6[%c0_12, %c0_13] : memref<8x128xf32, #tpu.memory_space<vmem>>, vector<8x128xf32>
    tpu.vector_store %arg6[%c0_12, %c0_13], %14 {strides = array<i32>} : memref<8x128xf32, #tpu.memory_space<vmem>>, vector<8x128xf32>,
    return
  }
  func.func @transform_0(%arg0: i32) -> (i32, i32) {
    %c0_i32 = arith.constant 0 : i32
    %c0_i32_0 = arith.constant 0 : i32
    return %arg0, %c0_i32 : i32, i32
  }
  func.func @transform_1(%arg0: i32) -> (i32, i32) {
    %c0_i32 = arith.constant 0 : i32
    %c0_i32_0 = arith.constant 0 : i32
    %c0_i32_1 = arith.constant 0 : i32
    return %c0_i32, %c0_i32_0 : i32, i32
  }
  func.func @transform_2(%arg0: i32) -> (i32, i32) {
    %c0_i32 = arith.constant 0 : i32
    %c0_i32_0 = arith.constant 0 : i32
    %c0_i32_1 = arith.constant 0 : i32
    return %c0_i32, %c0_i32_0 : i32, i32
  }
  func.func @transform_3(%arg0: i32) -> (i32, i32) {
    %c0_i32 = arith.constant 0 : i32
    %c0_i32_0 = arith.constant 0 : i32
    %c0_i32_1 = arith.constant 0 : i32
    return %c0_i32, %c0_i32_0 : i32, i32
  }
  func.func @transform_4(%arg0: i32) -> (i32, i32) {
    %c0_i32 = arith.constant 0 : i32
    %c0_i32_0 = arith.constant 0 : i32
    %c0_i32_1 = arith.constant 0 : i32
    return %c0_i32, %c0_i32_0 : i32, i32
  }
  func.func @transform_5(%arg0: i32) -> (i32, i32) {
    %c0_i32 = arith.constant 0 : i32
    %c0_i32_0 = arith.constant 0 : i32
    return %arg0, %c0_i32 : i32, i32
  }
}

</mosaic_0001>

<bundles_post_ra>
// kernel: tpu_custom_call.1
= control target key start
LH: loop header
LB: loop body
LE: loop exit
PB: predicated region body
PF: predicated region fallthrough
CT: control target
= control target key end

     0   :  { %10 = vsyncpa [#allocation3], 0  ;;  %s1120_s0 = inlined_call_operand.hbm [shape: f32[16,64], index: 0, kind: input, shape index: {}]   ;;  %s1121_s1 = inlined_call_operand.hbm [shape: f32[64,128], index: 1, kind: input, shape index: {}]   ;;  %s1122_s2 = inlined_call_operand.vmem [shape: f32[1,128], index: 2, kind: input, shape index: {}]   ;;  %s1123_s3 = inlined_call_operand.hbm [shape: f32[128,128], index: 3, kind: input, shape index: {}]   ;;  %s1124_s4 = inlined_call_operand.vmem [shape: f32[1,128], index: 4, kind: input, shape index: {}]   ;;  %s1125_s5 = inlined_call_operand.hbm [shape: f32[16,128], index: 5, kind: output, shape index: {}]  }
   0x1   :  { %12 = vsyncpa [#allocation3 + $0x1], 0 }
   0x2   :  { %13 = vsyncpa [#allocation6], 0 }
   0x3   :  { %14 = vsyncpa [#allocation4], 0 }
   0x4   :  { %16 = vsyncpa [#allocation4 + $0x1], 0  ;;  %s916_s18 = smov 0   ;;  %s918_s19 = smov 0  }
   0x5   :  { %s920_s20 = smov 0   ;;  %s922_s21 = smov 0  }
   0x6 LB: > { %s937_s22 = sadd.s32 4294967295, %s876_s21   ;;  %s558_s23 = sadd.s32 4294967294, %s876_s21   ;;  %s876_s21 = sphi %s922_s21, %s1147_s21   ;;  %s872_s20 = sphi %s920_s20, %s1146_s20   ;;  %s868_s19 = sphi %s918_s19, %s1145_s19   ;;  %s864_s18 = sphi %s916_s18, %s1144_s18  }
   0x7   : > { %p42_p0 = scmp.ne.s32.totalorder %s868_s19, %s864_s18  ;;  %p1126_p1 = scmp.eq.s32.totalorder %s937_s22, 0 }
   0x8   : > { %p156_p3 = scmp.eq.s32.totalorder %s558_s23, 1  ;;  %p559_p5 = scmp.ge.s32.totalorder %s876_s21, 1 }
   0x9   : > { %p946_p4 = por %p1126_p1, %p42_p0  ;;  %p163_p7 = scmp.lt.s32.totalorder %s876_s21, 3 }
   0xa   : > { %p951_p6 = por %p156_p3, %p42_p0  ;;  %s878_s27 = smov [#allocation5]  }
   0xb   : > { %s1130_s24 = scalar_select %p946_p4, 1, 0 }
   0xc   : > { %s1131_s25 = scalar_select %p951_p6, 1, 0 }
   0xd   : > { %p956_p8 = pnand %p559_p5, %p163_p7  ;;  %s175_s28 = sshll.u32 %s878_s27, 4  ;;  %s176_s28 = int_to_ptr.vmem [resolvable:$true] %s175_s28 }
   0xe   : > { %s879_s30 = smov [#allocation7]   ;;  %s739_s7 = scalar_lea.vmem %s176_s28, 1024 }
   0xf   : > { %s1132_s26 = scalar_select %p956_p8, 1, 0 }
  0x10   : > { %p669_p9 = pneg %p956_p8  ;;  %s191_s6 = sshll.u32 %s879_s30, 4  ;;  %s192_s6 = int_to_ptr.vmem [resolvable:$true] %s191_s6 }
  0x11   : > { %p740_p13 = scmp.ne.s32.totalorder %s176_s28, %s739_s7  ;;  %p747_p5 = scmp.lt.s32.totalorder %s176_s28, %s176_s28 }
  0x12   : > { %p965_p11 = pnand %p669_p9, %p1126_p1  ;;  %p748_p7 = scmp.lt.s32.totalorder %s739_s7, %s739_s7 }
  0x14   : > { %p730_p12 = pneg %p965_p11  ;;  %p749_p10 = por %p748_p7, %p747_p5 }
  0x16   : > { %p742_p0 = pnand %p740_p13, %p730_p12 }
  0x18   : > { %p743_p3 = pneg %p742_p0 }
  0x1a   : > { %p750_p9 = pnand %p749_p10, %p743_p3 }
  0x1c   : > { %753 = shalt.err (!%p750_p9)
}
  0x1d   : > { %s880_s8 = smov 128   ;;  %s881_s9 = smov 8  }
  0x1e   : > { %672 = dma.hbm_to_vmem [thread:$0]  (!%p965_p11), %s1121_s1, 1024, %s176_s28, [#allocation6], %s880_s8, %s880_s8, %s881_s9  }
  0x1f   : > { %s765_s12 = scalar_lea.vmem %s192_s6, 2048  ;;  %p773_p2 = scmp.lt.s32.totalorder %s192_s6, %s192_s6 }
  0x20   : > { %p766_p1 = scmp.ne.s32.totalorder %s192_s6, %s765_s12  ;;  %p774_p6 = scmp.lt.s32.totalorder %s765_s12, %s765_s12 }
  0x22   : > { %p768_p13 = pnand %p766_p1, %p730_p12  ;;  %p775_p5 = por %p774_p6, %p773_p2 }
  0x24   : > { %p769_p0 = pneg %p768_p13 }
  0x26   : > { %p776_p10 = pnand %p775_p5, %p769_p0 }
  0x28   : > { %779 = shalt.err (!%p776_p10)
}
  0x29   : > { %675 = dma.hbm_to_vmem [thread:$0]  (!%p965_p11), %s1123_s3, 2048, %s192_s6, [#allocation6], %s880_s8, %s880_s8, %s881_s9  }
  0x2a   : > { %s988_s15 = sadd.s32 1, %s876_s21   ;;  %s29_s16 = sadd.s32 1, %s872_s20 }
  0x2b   : > { %s26_s17 = ssub.s32 %s876_s21, %s988_s15  ;;  %p36_p1 = scmp.ne.s32.totalorder %s872_s20, %s868_s19 }
  0x2c   : > { %p27_p2 = scmp.eq.s32.totalorder %s26_s17, 0  ;;  %p37_p6 = scmp.eq.s32.totalorder %s876_s21, 0 }
  0x2d   : > { %p1134_p12 = scmp.eq.s32.totalorder %s937_s22, 1  ;;  %p686_p7 = scmp.lt.s32.totalorder %s876_s21, 2 }
  0x2e   : > { %s1004_s27 = scalar_select %p27_p2, %s872_s20, %s29_s16  }
  0x2f   : > { %p998_p3 = por %p1134_p12, %p36_p1  ;;  %p38_p9 = por %p37_p6, %p36_p1 }
  0x30   : > { %s208_s28 = sand.u32 1, %s872_s20   ;;  %s564_s30 = sshll.u32 %s876_s21, 7 }
  0x31   : > { %s1135_s23 = scalar_select %p998_p3, 1, 0 }
  0x32   : > { %s563_s29 = sshll.u32 %s208_s28, 3  ;;  %s1011_s8 = scalar_lea.hbm %s1120_s0, %s564_s30 }
  0x33   : > { %s212_s9 = scalar_lea.vmem [#allocation2], %s563_s29  ;;  %p1013_p11 = pnand %p686_p7, %p38_p9 }
  0x34   : > { %s219_s10 = sshll.u32 %s212_s9, 4  ;;  %s209_s12 = scalar_lea.sflag [#allocation3], %s208_s28  ;;  %s220_s10 = int_to_ptr.vmem [resolvable:$true] %s219_s10 }
  0x35   : > { %s780_s13 = scalar_lea.hbm %s1011_s8, 128  ;;  %p782_p0 = pneg %p1013_p11 }
  0x36   : > { %p781_p13 = scmp.ne.s32.totalorder %s1011_s8, %s780_s13  ;;  %s785_s17 = scalar_lea.hbm %s1120_s0, 256 }
  0x37   : > { %p786_p1 = scmp.lt.s32.totalorder %s1011_s8, %s1120_s0  ;;  %p787_p2 = scmp.lt.s32.totalorder %s785_s17, %s780_s13 }
  0x38   : > { %p783_p5 = pnand %p782_p0, %p781_p13 }
  0x39   : > { %p788_p6 = por %p787_p2, %p786_p1 }
  0x3a   : > { %p784_p10 = pneg %p783_p5 }
  0x3c   : > { %p789_p12 = pnand %p788_p6, %p784_p10 }
  0x3e   : > { %792 = shalt.err (!%p789_p12)
}
  0x3f   : > { %s793_s6 = scalar_lea.vmem %s220_s10, 128  ;;  %s882_s28 = smov [#allocation2]  }
  0x40   : > { %p794_p7 = scmp.ne.s32.totalorder %s220_s10, %s793_s6  ;;  %s798_s7 = sshll.u32 %s882_s28, 4  ;;  %s799_s7 = int_to_ptr.vmem [resolvable:$false] %s798_s7 }
  0x41   : > { %s800_s9 = scalar_lea.vmem %s799_s7, 256  ;;  %p801_p13 = scmp.lt.s32.totalorder %s220_s10, %s799_s7 }
  0x42   : > { %p796_p9 = pnand %p794_p7, %p782_p0  ;;  %p802_p5 = scmp.lt.s32.totalorder %s800_s9, %s793_s6 }
  0x44   : > { %p797_p3 = pneg %p796_p9  ;;  %p803_p4 = por %p802_p5, %p801_p13 }
  0x46   : > { %p804_p8 = pnand %p803_p4, %p797_p3 }
  0x48   : > { %807 = shalt.err (!%p804_p8)
}
  0x49   : > { %679 = dma.hbm_to_vmem [thread:$0]  (!%p1013_p11), %s1011_s8, 128, %s220_s10, %s209_s12  }
  0x4a   : > { %p1137_p10 = scmp.ne.s32.totalorder %s1132_s26, 0 }
  0x4b   : > { %s1034_s13 = sand.u32 (!%p1137_p10), 1, %s868_s19   ;;  %p1138_p4 = scmp.ne.s32.totalorder (!%p1137_p10), %s1130_s24, 0 }
  0x4c   : > { %228 = sbr.rel (%p1137_p10) target bundleno = 510 (0x1fe), region = 40  ;;  %s566_s14 = sshll.u32 (!%p1137_p10), %s1034_s13, 3 }
  0x4d   : > { %s231_s16 = scalar_lea.sflag (!%p1137_p10), [#allocation3], %s1034_s13  ;;  %s1040_s17 = scalar_lea.vmem (!%p1137_p10), [#allocation2], %s566_s14 }
  0x51   : > { %851 = dma.done.wait (%p1138_p4), %s231_s16, 128  }
  0x52   : > { %853 = vsyncadd (%p1138_p4), %s231_s16, 4294967168  ;;  %p1139_p8 = scmp.eq.s32.totalorder %s937_s22, 0 }
  0x54   : > { %855 = dma.done.wait (%p1139_p8), [#allocation6], 3072   ;;  %p1140_p3 = pmov %p1139_p8 }
  0x55   : > { %v883_v0 = vmov 0.0   ;;  %vm884_vm0 = vmmov 0   ;;  %v277_v1 = vld [vmem:[#allocation5 + $0x38] sm:$0xff]  ;;  %v276_v2 = vld [vmem:[#allocation5 + $0x30] sm:$0xff]  ;;  %v275_v3 = vld [vmem:[#allocation5 + $0x28] sm:$0xff]  ;;  %vm285_vm1 = vcmask 523264  }
  0x56   : > { %857 = vsyncadd (%p1140_p3), [#allocation6], 4294964224  ;;  %603 = vmatprep.subr.mxu0 %v883_v0  ;;  %619 = vmatprep.mubr.msk.f32.mxu0 %vm884_vm0, %v883_v0  ;;  %v375_v4 = vld [vmem:[#allocation7 + $0x78] sm:$0xff]  ;;  %v374_v5 = vld [vmem:[#allocation7 + $0x70] sm:$0xff]  ;;  %s574_s11 = sshll.u32 %s937_s22, 7  ;;  %s268_s12 = scalar_lea.vmem [#allocation8], %s566_s14 }
  0x57   : > { %622 = vmatprep.subr.mxu1 %v883_v0  ;;  %654 = vmatprep.mubr.msk.f32.mxu1 %vm884_vm0, %v883_v0  ;;  %v274_v6 = vld [vmem:[#allocation5 + $0x20] sm:$0xff]  ;;  %v373_v7 = vld [vmem:[#allocation7 + $0x68] sm:$0xff]  ;;  %v273_v8 = vld [vmem:[#allocation5 + $0x18] sm:$0xff]  ;;  %s469_s30 = sshll.u32 %s268_s12, 4  ;;  %s467_s28 = scalar_lea.hbm %s1125_s5, %s574_s11  ;;  %s470_s30 = int_to_ptr.vmem [resolvable:$true] %s469_s30 }
  0x58   : > { %604 = vmatpush3.msra.mxu0 %v277_v1  ;;  %623 = vmatpush3.msra.mxu1 %v375_v4  ;;  %v372_v9 = vld [vmem:[#allocation7 + $0x60] sm:$0xff]  ;;  %v272_v10 = vld [vmem:[#allocation5 + $0x10] sm:$0xff]  ;;  %v371_v11 = vld [vmem:[#allocation7 + $0x58] sm:$0xff]  ;;  %s456_s7 = scalar_lea.sflag [#allocation4], %s1034_s13  ;;  %s808_s9 = scalar_lea.vmem %s470_s30, 128 }
  0x59   : > { %605 = vmatprep.subr.mxu0 %v883_v0  ;;  %624 = vmatprep.subr.mxu1 %v883_v0  ;;  %v271_v12 = vld [vmem:[#allocation5 + $0x8] sm:$0xff]  ;;  %v370_v13 = vld [vmem:[#allocation7 + $0x50] sm:$0xff]  ;;  %v270_v14 = vld [vmem:[#allocation5] sm:$0xff]  ;;  %p809_p11 = scmp.ne.s32.totalorder %s470_s30, %s808_s9  ;;  %p1141_p0 = scmp.ne.s32.totalorder %s1135_s23, 0 }
  0x5a   : > { %606 = vmatpush3.msra.mxu0 %v276_v2  ;;  %625 = vmatpush3.msra.mxu1 %v374_v5  ;;  %v269_v15 = vld [vmem:[%s1040_s17] sm:$0xff]  ;;  %v369_v16 = vld [vmem:[#allocation7 + $0x48] sm:$0xff]  ;;  %v368_v17 = vld [vmem:[#allocation7 + $0x40] sm:$0xff]  ;;  %s885_s16 = smov [#allocation8]  }
  0x5b   : > { %607 = vmatprep.subr.mxu0 %v883_v0  ;;  %626 = vmatprep.subr.mxu1 %v883_v0  ;;  %v367_v18 = vld [vmem:[#allocation7 + $0x38] sm:$0xff]  ;;  %v366_v19 = vld [vmem:[#allocation7 + $0x30] sm:$0xff]  ;;  %v365_v20 = vld [vmem:[#allocation7 + $0x28] sm:$0xff]  ;;  %p810_p1 = pnand %p809_p11, %p1141_p0  ;;  %s812_s22 = sshll.u32 %s885_s16, 4  ;;  %s813_s22 = int_to_ptr.vmem [resolvable:$false] %s812_s22 }
  0x5c   : > { %608 = vmatpush3.msra.mxu0 %v275_v3  ;;  %627 = vmatpush3.msra.mxu1 %v373_v7  ;;  %v364_v21 = vld [vmem:[#allocation7 + $0x20] sm:$0xff]  ;;  %v363_v22 = vld [vmem:[#allocation7 + $0x18] sm:$0xff]  ;;  %v362_v23 = vld [vmem:[#allocation7 + $0x10] sm:$0xff]  ;;  %s814_s14 = scalar_lea.vmem %s813_s22, 256  ;;  %p815_p6 = scmp.lt.s32.totalorder %s470_s30, %s813_s22 }
  0x5d   : > { %609 = vmatprep.subr.mxu0 %v883_v0  ;;  %628 = vmatprep.subr.mxu1 %v883_v0  ;;  %v361_v24 = vld [vmem:[#allocation7 + $0x8] sm:$0xff]  ;;  %v360_v25 = vld [vmem:[#allocation7] sm:$0xff]  ;;  %v570_v26 = vld [vmem:[%s1122_s2] ss:$0 sm:$0xff]  ;;  %p811_p2 = pneg %p810_p1  ;;  %p816_p12 = scmp.lt.s32.totalorder %s814_s14, %s808_s9 }
  0x5e   : > { %610 = vmatpush3.msra.mxu0 %v274_v6  ;;  %629 = vmatpush3.msra.mxu1 %v372_v9  ;;  %v572_v31 = vld [vmem:[%s1124_s4] ss:$0 sm:$0xff] }
  0x5f   : > { %611 = vmatprep.subr.mxu0 %v883_v0  ;;  %630 = vmatprep.subr.mxu1 %v883_v0  ;;  %p817_p7 = por %p816_p12, %p815_p6 }
  0x60   : > { %612 = vmatpush3.msra.mxu0 %v273_v8  ;;  %631 = vmatpush3.msra.mxu1 %v371_v11 }
  0x61   : > { %613 = vmatprep.subr.mxu0 %v883_v0  ;;  %632 = vmatprep.subr.mxu1 %v883_v0  ;;  %p818_p9 = pnand %p817_p7, %p811_p2 }
  0x62   : > { %614 = vmatpush3.msra.mxu0 %v272_v10  ;;  %633 = vmatpush3.msra.mxu1 %v370_v13 }
  0x63   : > { %615 = vmatprep.subr.mxu0 %v883_v0  ;;  %634 = vmatprep.subr.mxu1 %v883_v0 }
  0x64   : > { %616 = vmatpush3.msra.mxu0 %v271_v12  ;;  %635 = vmatpush3.msra.mxu1 %v369_v16 }
  0x65   : > { %617 = vmatprep.subr.mxu0 %v883_v0  ;;  %636 = vmatprep.subr.mxu1 %v883_v0 }
  0x66   : > { %618 = vmatpush3.msra.mxu0 %v270_v14  ;;  %637 = vmatpush3.msra.mxu1 %v368_v17 }
  0x67   : > { %620 = vmatmul.mubr.msk.f32.vlgmr.msra.gmra.mxu0 %vm285_vm1, %v269_v15  ;;  %638 = vmatprep.subr.mxu1 %v883_v0 }
  0x68   : > { %639 = vmatpush3.msra.mxu1 %v367_v18 }
  0x69   : > { %640 = vmatprep.subr.mxu1 %v883_v0 }
  0x6a   : > { %641 = vmatpush3.msra.mxu1 %v366_v19 }
  0x6b   : > { %642 = vmatprep.subr.mxu1 %v883_v0 }
  0x6c   : > { %643 = vmatpush3.msra.mxu1 %v365_v20 }
  0x6d   : > { %644 = vmatprep.subr.mxu1 %v883_v0 }
  0x6e   : > { %645 = vmatpush3.msra.mxu1 %v364_v21 }
  0x6f   : > { %646 = vmatprep.subr.mxu1 %v883_v0 }
  0x70   : > { %647 = vmatpush3.msra.mxu1 %v363_v22 }
  0x71   : > { %648 = vmatprep.subr.mxu1 %v883_v0 }
  0x72   : > { %649 = vmatpush3.msra.mxu1 %v362_v23 }
  0x73   : > { %650 = vmatprep.subr.mxu1 %v883_v0 }
  0x74   : > { %651 = vmatpush3.msra.mxu1 %v361_v24 }
  0x75   : > { %652 = vmatprep.subr.mxu1 %v883_v0 }
  0x76   : > { %653 = vmatpush3.msra.mxu1 %v360_v25 }
 0x127   : > { %v355_v27 = vpop.f32.mrf.mxu0 }
 0x128   : > { %v356_v28 = vadd.f32 %v570_v26, %v355_v27 }
 0x129   : > { %v621_v29 = vpop.f32.mrf.mxu0 }
 0x12a   : > { %v359_v30 = vmax.f32 %v356_v28, 0.0 }
 0x12c   : > { %655 = vmatmul.mubr.f32.vlgmr.msra.gmra.mxu1 %v359_v30 }
 0x1ec   : > { %v449_v32 = vpop.f32.mrf.mxu1 }
 0x1ed   : > { %v450_v33 = vadd.f32 %v572_v31, %v449_v32 }
 0x1ee   : > { %v656_v34 = vpop.f32.mrf.mxu1 }
 0x1ef   : > { %v453_v35 = vmax.f32 %v450_v33, 0.0 }
 0x1f1   : > { %454 = vst [vmem:[%s268_s12] sm:$0xff] %v453_v35 }
 0x1f2   : > { %821 = shalt.err (!%p818_p9)
}
 0x1f3   : > { %s822_s17 = scalar_lea.hbm %s467_s28, 128  ;;  %s826_s26 = scalar_lea.hbm %s1125_s5, 256 }
 0x1f4   : > { %p823_p13 = scmp.ne.s32.totalorder %s467_s28, %s822_s17  ;;  %p827_p4 = scmp.lt.s32.totalorder %s467_s28, %s1125_s5 }
 0x1f5   : > { %p828_p8 = scmp.lt.s32.totalorder %s826_s26, %s822_s17 }
 0x1f6   : > { %p824_p5 = pnand %p823_p13, %p1141_p0 }
 0x1f7   : > { %p829_p3 = por %p828_p8, %p827_p4 }
 0x1f8   : > { %p825_p10 = pneg %p824_p5 }
 0x1fa   : > { %p830_p11 = pnand %p829_p3, %p825_p10 }
 0x1fc   : > { %833 = shalt.err (!%p830_p11)
}
 0x1fd   : > { %667 = dma.vmem_to_hbm [thread:$0]  (%p1141_p0), %s470_s30, 128, %s467_s28, %s456_s7  }
 0x1fe PF: > { %s481_s11 = sand.u32 1, %s864_s18   ;;  %p1142_p1 = scmp.ne.s32.totalorder %s1131_s25, 0 }
 0x1ff   : > { %p1143_p2 = scmp.ge.s32.totalorder %s876_s21, 2  ;;  %s482_s12 = scalar_lea.sflag [#allocation4], %s481_s11 }
 0x201   : > { %p681_p6 = pnand %p1143_p2, %p1142_p1 }
 0x203   : > { %p682_p12 = pneg %p681_p6 }
 0x205   : > { %859 = dma.done.wait (%p682_p12), %s482_s12, 128  }
 0x206   : > { %861 = vsyncadd (%p682_p12), %s482_s12, 4294967168  ;;  %p19_p7 = scmp.ge.s32.totalorder %s988_s15, 4   ;;  %s1144_s18 = smov %s868_s19 }
 0x207   : > { %s1145_s19 = smov %s872_s20  ;;  %s1146_s20 = smov %s1004_s27 }
 0x208   : > { %s1147_s21 = smov %s988_s15  ;;  %21 = sbr.rel (!%p19_p7) target bundleno = 6 (0x6), region = 93 }
 0x20d   :  { %487 = vsyncpa [#allocation3], 1 }
 0x20e   :  { %489 = vsyncpa [#allocation3 + $0x1], 1 }
 0x20f   :  { %490 = vsyncpa [#allocation6], 1 }
 0x210   :  { %491 = vsyncpa [#allocation4], 1 }
 0x211   :  { %493 = vsyncpa [#allocation4 + $0x1], 1 }

</bundles_post_ra>
